<compile_context>
chip_gen: v7x
topology: tpu7x:2x2x1
jax: 0.10.0
libtpu: 0.0.40
codegen_flags: <defaults>
</compile_context>

<pallas_src>
import functools

import jax
import jax.numpy as jnp
from jax.experimental import pallas as pl
from jax.experimental.pallas import tpu as pltpu


def _round_up(x, m):
    return ((x + m - 1) // m) * m


def _pair_slim_kernel(ru_ref, wi_ref, wj_ref, pred_i_ref, pred_j_ref,
                      acc_i_ref, acc_j_ref, *,
                      lane, n_chunks, tn, item_num, mask_tail):
    """One (tb, tn) tile: VALU-accumulate into lane-dense (tb, lane) scratch.

    Grid = (batch_tiles, item_tiles); item axis (k) is the trailing reduction
    axis.  Final cross-lane reduce + (tb, 1) store happen only at the last k.
    """
    k = pl.program_id(1)

    @pl.when(k == 0)
    def _():
        acc_i_ref[...] = jnp.zeros_like(acc_i_ref)
        acc_j_ref[...] = jnp.zeros_like(acc_j_ref)

    # bf16 -> f32 is exact for ru (0/1 matrix); wi/wj were rounded to bf16 in
    # the wrapper (acceptable for a ranking score).  All math is f32.
    ru = ru_ref[...].astype(jnp.float32)                      # (tb, tn)
    wi = wi_ref[...].astype(jnp.float32)
    wj = wj_ref[...].astype(jnp.float32)

    prod_i = ru * wi
    prod_j = ru * wj

    if mask_tail:
        # Last k tile may extend past item_num; the out-of-bounds region of
        # the fetched block is unspecified (possibly NaN/Inf), so zero the
        # products there before accumulating.
        col = k * tn + jax.lax.broadcasted_iota(jnp.int32, prod_i.shape, 1)
        valid = col < item_num
        prod_i = jnp.where(valid, prod_i, 0.0)
        prod_j = jnp.where(valid, prod_j, 0.0)

    # Sum the tn axis down to `lane` (=128) using only lane-aligned slice adds
    # (pure VALU, no per-step XLU cross-lane reduce, no layout change).
    si = prod_i[:, 0:lane]
    sj = prod_j[:, 0:lane]
    for c in range(1, n_chunks):
        si = si + prod_i[:, c * lane:(c + 1) * lane]
        sj = sj + prod_j[:, c * lane:(c + 1) * lane]
    acc_i_ref[...] += si
    acc_j_ref[...] += sj

    @pl.when(k == pl.num_programs(1) - 1)
    def _():
        pred_i_ref[...] = jnp.sum(acc_i_ref[...], axis=-1, keepdims=True)
        pred_j_ref[...] = jnp.sum(acc_j_ref[...], axis=-1, keepdims=True)


@functools.partial(jax.jit, static_argnames=("tb", "tn"))
def pair_slim_forward(A, W, user, item_i, item_j, *, tb=256, tn=2048):
    """Pallas equivalent of PairSLiM.forward(user, item_i, item_j)."""
    batch = user.shape[0]
    item_num = A.shape[1]

    user = user.astype(jnp.int32)
    item_i = item_i.astype(jnp.int32)
    item_j = item_j.astype(jnp.int32)

    # ---- tile sizes -------------------------------------------------------
    # tb: multiple of 16 (bf16 sublane packing).  Cap so that >=2 batch tiles
    # exist when batch allows (feeds both TensorCores on v7x via the
    # "parallel" batch axis).
    tb = max(16, (tb // 16) * 16)
    min_pb = _round_up(batch, 16)
    tb = min(tb, min_pb)
    if min_pb >= 32:
        tb = min(tb, _round_up(min_pb // 2, 16))
    padded_b = _round_up(batch, tb)

    # tn: multiple of 128 lanes, never larger than the 128-floor of item_num
    # (so only the *last* k tile can be ragged); for tiny item_num (<128) use
    # the full extent as a single exact block.
    tn = max(128, (tn // 128) * 128)
    if item_num < 128:
        tn = item_num
    else:
        tn = min(tn, (item_num // 128) * 128)
    grid_k = (item_num + tn - 1) // tn
    mask_tail = (item_num % tn) != 0

    lane = 128 if tn % 128 == 0 else tn
    n_chunks = tn // lane

    # ---- gathers (cast AFTER gathering; feed bf16 to halve kernel DMA) ----
    # Batch padding is folded into the 1-D index vectors (cheap), so the
    # gathered slabs are already an exact multiple of tb rows and no
    # (batch, item_num) pad pass is needed.  Padded rows reuse index 0 and
    # their outputs are sliced off.
    pad_rows = padded_b - batch
    user_p = jnp.pad(user, (0, pad_rows))
    item_i_p = jnp.pad(item_i, (0, pad_rows))
    item_j_p = jnp.pad(item_j, (0, pad_rows))

    ru = jnp.take(A, user_p, axis=0).astype(jnp.bfloat16)     # 0/1 -> exact
    wi = jnp.take(W, item_i_p, axis=0).astype(jnp.bfloat16)
    wj = jnp.take(W, item_j_p, axis=0).astype(jnp.bfloat16)

    kernel = functools.partial(
        _pair_slim_kernel,
        lane=lane, n_chunks=n_chunks, tn=tn,
        item_num=item_num, mask_tail=mask_tail)

    in_spec = pl.BlockSpec((tb, tn), lambda b, k: (b, k))
    out_spec = pl.BlockSpec((tb, 1), lambda b, k: (b, 0))   # resident across k

    pred_i, pred_j = pl.pallas_call(
        kernel,
        out_shape=(jax.ShapeDtypeStruct((padded_b, 1), jnp.float32),
                   jax.ShapeDtypeStruct((padded_b, 1), jnp.float32)),
        grid_spec=pltpu.PrefetchScalarGridSpec(
            num_scalar_prefetch=0,
            grid=(padded_b // tb, grid_k),
            in_specs=[in_spec, in_spec, in_spec],
            out_specs=(out_spec, out_spec),
            scratch_shapes=[pltpu.VMEM((tb, lane), jnp.float32),
                            pltpu.VMEM((tb, lane), jnp.float32)],
        ),
        compiler_params=pltpu.CompilerParams(
            # Batch tiles are independent (megacore-parallel on v7x); the item
            # axis is the in-place reduction axis.
            dimension_semantics=("parallel", "arbitrary"),
            vmem_limit_bytes=48 * 1024 * 1024,
        ),
    )(ru, wi, wj)

    return pred_i[:batch, 0], pred_j[:batch, 0]


if __name__ == "__main__":
    key = jax.random.PRNGKey(0)

    def make_case(case_key, user_num, item_num, batch):
        k_a, k_w, k_u, k_i, k_j = jax.random.split(case_key, 5)
        # Binary interaction matrix A (like the one built from the dataframe).
        A = (jax.random.uniform(k_a, (user_num, item_num)) < 0.3).astype(jnp.float32)
        # W = nn.Embedding(item_num, item_num); normal(std=0.01), clamp(0), zero diag.
        W = jax.random.normal(k_w, (item_num, item_num), dtype=jnp.float32) * 0.01
        W = jnp.clip(W, 0.0, None)
        W = W * (1.0 - jnp.eye(item_num, dtype=jnp.float32))
        user = jax.random.randint(k_u, (batch,), 0, user_num, dtype=jnp.int32)
        item_i = jax.random.randint(k_i, (batch,), 0, item_num, dtype=jnp.int32)
        item_j = jax.random.randint(k_j, (batch,), 0, item_num, dtype=jnp.int32)
        return A, W, user, item_i, item_j

    k1, k2 = jax.random.split(key)

    # Case 1: lane-aligned item_num (single exact k tile, no masking path).
    A, W, user, item_i, item_j = make_case(k1, 8, 256, 8)
    pred_i, pred_j = pair_slim_forward(A, W, user, item_i, item_j)
    jax.block_until_ready((pred_i, pred_j))
    ref_i = jnp.sum(A[user] * W[item_i], axis=-1)
    ref_j = jnp.sum(A[user] * W[item_j], axis=-1)
    assert pred_i.shape == (8,) and pred_j.shape == (8,)
    # wi/wj travel as bf16 -> allow ~bf16 precision vs the f32 reference.
    assert jnp.allclose(pred_i, ref_i, rtol=2e-2, atol=5e-3)
    assert jnp.allclose(pred_j, ref_j, rtol=2e-2, atol=5e-3)

    # Case 2: ragged item_num / batch (exercises in-kernel tail masking,
    # index-vector padding — no slab pad pass anywhere).
    A2, W2, user2, item_i2, item_j2 = make_case(k2, 6, 200, 10)
    pred_i2, pred_j2 = pair_slim_forward(A2, W2, user2, item_i2, item_j2)
    jax.block_until_ready((pred_i2, pred_j2))
    ref_i2 = jnp.sum(A2[user2] * W2[item_i2], axis=-1)
    ref_j2 = jnp.sum(A2[user2] * W2[item_j2], axis=-1)
    assert pred_i2.shape == (10,) and pred_j2.shape == (10,)
    assert jnp.allclose(pred_i2, ref_i2, rtol=2e-2, atol=5e-3)
    assert jnp.allclose(pred_j2, ref_j2, rtol=2e-2, atol=5e-3)

    print("KERNEL_OK")
</pallas_src>

<mosaic_0001>
module attributes {stable_mosaic.version = 11 : i64} {
  func.func @_pair_slim_kernel(%arg0: i32, %arg1: i32, %arg2: memref<16x256xbf16, #tpu.memory_space<vmem>>, %arg3: memref<16x256xbf16, #tpu.memory_space<vmem>>, %arg4: memref<16x256xbf16, #tpu.memory_space<vmem>>, %arg5: memref<16x1xf32, #tpu.memory_space<vmem>>, %arg6: memref<16x1xf32, #tpu.memory_space<vmem>>, %arg7: memref<16x128xf32, #tpu.memory_space<vmem>>, %arg8: memref<16x128xf32, #tpu.memory_space<vmem>>) attributes {dimension_semantics = [#tpu.dimension_semantics<parallel>, #tpu.dimension_semantics<arbitrary>], iteration_bounds = array<i64: 1, 1>, scalar_prefetch = 0 : i64, scratch_operands = 2 : i64, tpu.core_type = #tpu.core_type<tc>, window_params = [{transform_indices = @transform_0, window_bounds = array<i64: 16, 256>}, {transform_indices = @transform_1, window_bounds = array<i64: 16, 256>}, {transform_indices = @transform_2, window_bounds = array<i64: 16, 256>}, {transform_indices = @transform_3, window_bounds = array<i64: 16, 1>}, {transform_indices = @transform_4, window_bounds = array<i64: 16, 1>}]} {
    %c0_i32 = arith.constant 0 : i32
    %0 = arith.cmpi eq, %arg1, %c0_i32 : i32
    %1 = arith.extui %0 : i1 to i32
    %c0_i32_0 = arith.constant 0 : i32
    %2 = arith.cmpi ne, %1, %c0_i32_0 : i32
    scf.if %2 {
      %cst = arith.constant 0.000000e+00 : f32
      %26 = vector.broadcast %cst : f32 to vector<16x128xf32>
      %c0_16 = arith.constant 0 : index
      %c0_17 = arith.constant 0 : index
      %27 = vector.load %arg7[%c0_16, %c0_17] : memref<16x128xf32, #tpu.memory_space<vmem>>, vector<16x128xf32>
      tpu.vector_store %arg7[%c0_16, %c0_17], %26 {strides = array<i32>} : memref<16x128xf32, #tpu.memory_space<vmem>>, vector<16x128xf32>,
      %cst_18 = arith.constant 0.000000e+00 : f32
      %28 = vector.broadcast %cst_18 : f32 to vector<16x128xf32>
      %c0_19 = arith.constant 0 : index
      %c0_20 = arith.constant 0 : index
      %29 = vector.load %arg8[%c0_19, %c0_20] : memref<16x128xf32, #tpu.memory_space<vmem>>, vector<16x128xf32>
      tpu.vector_store %arg8[%c0_19, %c0_20], %28 {strides = array<i32>} : memref<16x128xf32, #tpu.memory_space<vmem>>, vector<16x128xf32>,
    } else {
    }
    %c0 = arith.constant 0 : index
    %c0_1 = arith.constant 0 : index
    %3 = vector.load %arg2[%c0, %c0_1] : memref<16x256xbf16, #tpu.memory_space<vmem>>, vector<16x256xbf16>
    %4 = arith.extf %3 : vector<16x256xbf16> to vector<16x256xf32>
    %c0_2 = arith.constant 0 : index
    %c0_3 = arith.constant 0 : index
    %5 = vector.load %arg3[%c0_2, %c0_3] : memref<16x256xbf16, #tpu.memory_space<vmem>>, vector<16x256xbf16>
    %6 = arith.extf %5 : vector<16x256xbf16> to vector<16x256xf32>
    %c0_4 = arith.constant 0 : index
    %c0_5 = arith.constant 0 : index
    %7 = vector.load %arg4[%c0_4, %c0_5] : memref<16x256xbf16, #tpu.memory_space<vmem>>, vector<16x256xbf16>
    %8 = arith.extf %7 : vector<16x256xbf16> to vector<16x256xf32>
    %9 = arith.mulf %4, %6 : vector<16x256xf32>
    %10 = arith.mulf %4, %8 : vector<16x256xf32>
    %11 = vector.extract_strided_slice %9 {offsets = [0, 0], sizes = [16, 128], strides = [1, 1]} : vector<16x256xf32> to vector<16x128xf32>
    %12 = vector.extract_strided_slice %10 {offsets = [0, 0], sizes = [16, 128], strides = [1, 1]} : vector<16x256xf32> to vector<16x128xf32>
    %13 = vector.extract_strided_slice %9 {offsets = [0, 128], sizes = [16, 128], strides = [1, 1]} : vector<16x256xf32> to vector<16x128xf32>
    %14 = arith.addf %11, %13 : vector<16x128xf32>
    %15 = vector.extract_strided_slice %10 {offsets = [0, 128], sizes = [16, 128], strides = [1, 1]} : vector<16x256xf32> to vector<16x128xf32>
    %16 = arith.addf %12, %15 : vector<16x128xf32>
    %c0_6 = arith.constant 0 : index
    %c0_7 = arith.constant 0 : index
    %17 = vector.load %arg7[%c0_6, %c0_7] : memref<16x128xf32, #tpu.memory_space<vmem>>, vector<16x128xf32>
    %18 = arith.addf %17, %14 : vector<16x128xf32>
    %c0_8 = arith.constant 0 : index
    %c0_9 = arith.constant 0 : index
    %19 = vector.load %arg7[%c0_8, %c0_9] : memref<16x128xf32, #tpu.memory_space<vmem>>, vector<16x128xf32>
    tpu.vector_store %arg7[%c0_8, %c0_9], %18 {strides = array<i32>} : memref<16x128xf32, #tpu.memory_space<vmem>>, vector<16x128xf32>,
    %c0_10 = arith.constant 0 : index
    %c0_11 = arith.constant 0 : index
    %20 = vector.load %arg8[%c0_10, %c0_11] : memref<16x128xf32, #tpu.memory_space<vmem>>, vector<16x128xf32>
    %21 = arith.addf %20, %16 : vector<16x128xf32>
    %c0_12 = arith.constant 0 : index
    %c0_13 = arith.constant 0 : index
    %22 = vector.load %arg8[%c0_12, %c0_13] : memref<16x128xf32, #tpu.memory_space<vmem>>, vector<16x128xf32>
    tpu.vector_store %arg8[%c0_12, %c0_13], %21 {strides = array<i32>} : memref<16x128xf32, #tpu.memory_space<vmem>>, vector<16x128xf32>,
    %c0_i32_14 = arith.constant 0 : i32
    %23 = arith.cmpi eq, %arg1, %c0_i32_14 : i32
    %24 = arith.extui %23 : i1 to i32
    %c0_i32_15 = arith.constant 0 : i32
    %25 = arith.cmpi ne, %24, %c0_i32_15 : i32
    scf.if %25 {
      %c0_16 = arith.constant 0 : index
      %c0_17 = arith.constant 0 : index
      %26 = vector.load %arg7[%c0_16, %c0_17] : memref<16x128xf32, #tpu.memory_space<vmem>>, vector<16x128xf32>
      %cst = arith.constant dense<0.000000e+00> : vector<16xf32>
      %27 = vector.multi_reduction <add>, %26, %cst [1] : vector<16x128xf32> to vector<16xf32>
      %28 = vector.shape_cast %27 : vector<16xf32> to vector<16x1xf32>
      %c0_18 = arith.constant 0 : index
      %c0_19 = arith.constant 0 : index
      %29 = vector.load %arg5[%c0_18, %c0_19] : memref<16x1xf32, #tpu.memory_space<vmem>>, vector<16x1xf32>
      tpu.vector_store %arg5[%c0_18, %c0_19], %28 {strides = array<i32>} : memref<16x1xf32, #tpu.memory_space<vmem>>, vector<16x1xf32>,
      %c0_20 = arith.constant 0 : index
      %c0_21 = arith.constant 0 : index
      %30 = vector.load %arg8[%c0_20, %c0_21] : memref<16x128xf32, #tpu.memory_space<vmem>>, vector<16x128xf32>
      %cst_22 = arith.constant dense<0.000000e+00> : vector<16xf32>
      %31 = vector.multi_reduction <add>, %30, %cst_22 [1] : vector<16x128xf32> to vector<16xf32>
      %32 = vector.shape_cast %31 : vector<16xf32> to vector<16x1xf32>
      %c0_23 = arith.constant 0 : index
      %c0_24 = arith.constant 0 : index
      %33 = vector.load %arg6[%c0_23, %c0_24] : memref<16x1xf32, #tpu.memory_space<vmem>>, vector<16x1xf32>
      tpu.vector_store %arg6[%c0_23, %c0_24], %32 {strides = array<i32>} : memref<16x1xf32, #tpu.memory_space<vmem>>, vector<16x1xf32>,
    } else {
    }
    return
  }
  func.func @transform_0(%arg0: i32, %arg1: i32) -> (i32, i32) {
    %c0_i32 = arith.constant 0 : i32
    return %arg0, %arg1 : i32, i32
  }
  func.func @transform_1(%arg0: i32, %arg1: i32) -> (i32, i32) {
    %c0_i32 = arith.constant 0 : i32
    return %arg0, %arg1 : i32, i32
  }
  func.func @transform_2(%arg0: i32, %arg1: i32) -> (i32, i32) {
    %c0_i32 = arith.constant 0 : i32
    return %arg0, %arg1 : i32, i32
  }
  func.func @transform_3(%arg0: i32, %arg1: i32) -> (i32, i32) {
    %c0_i32 = arith.constant 0 : i32
    %c0_i32_0 = arith.constant 0 : i32
    return %arg0, %c0_i32 : i32, i32
  }
  func.func @transform_4(%arg0: i32, %arg1: i32) -> (i32, i32) {
    %c0_i32 = arith.constant 0 : i32
    %c0_i32_0 = arith.constant 0 : i32
    return %arg0, %c0_i32 : i32, i32
  }
}

</mosaic_0001>

<bundles_post_ra>
// kernel: pair_slim_forward.1
= control target key start
LH: loop header
LB: loop body
LE: loop exit
PB: predicated region body
PF: predicated region fallthrough
CT: control target
= control target key end

     0   :  { %vm75_vm0 = vcmask 7168   ;;  %s149_s0 = inlined_call_operand.vmem [shape: bf16[16,256], index: 0, kind: input, shape index: {}]   ;;  %s150_s2 = inlined_call_operand.vmem [shape: bf16[16,256], index: 2, kind: input, shape index: {}]   ;;  %s151_s1 = inlined_call_operand.vmem [shape: bf16[16,256], index: 1, kind: input, shape index: {}]   ;;  %s152_s4 = inlined_call_operand.vmem [shape: f32[16,1], index: 4, kind: output, shape index: {1}]   ;;  %s153_s3 = inlined_call_operand.vmem [shape: f32[16,1], index: 3, kind: output, shape index: {0}]  }
   0x1   :  { %v24_v0 = vld [vmem:[%s149_s0] sm:$0xff]  ;;  %v25_v7 = vld [vmem:[%s149_s0 + $0x8] sm:$0xff] }
   0x2   :  { %v36_v1 = vld [vmem:[%s150_s2] sm:$0xff]  ;;  %v26_v3 = vunpack.c.l.bf16 %v24_v0  ;;  %v27_v4 = vunpack.c.h.bf16 %v24_v0  ;;  %v37_v8 = vld [vmem:[%s150_s2 + $0x8] sm:$0xff]  ;;  %v28_v12 = vunpack.c.l.bf16 %v25_v7  ;;  %v29_v13 = vunpack.c.h.bf16 %v25_v7 }
   0x3   :  { %v30_v2 = vld [vmem:[%s151_s1] sm:$0xff]  ;;  %v38_v5 = vunpack.c.l.bf16 %v36_v1  ;;  %v39_v6 = vunpack.c.h.bf16 %v36_v1  ;;  %v31_v9 = vld [vmem:[%s151_s1 + $0x8] sm:$0xff]  ;;  %v40_v16 = vunpack.c.l.bf16 %v37_v8  ;;  %v41_v17 = vunpack.c.h.bf16 %v37_v8 }
   0x4   :  { %v32_v10 = vunpack.c.l.bf16 %v30_v2  ;;  %v33_v11 = vunpack.c.h.bf16 %v30_v2  ;;  %v34_v20 = vunpack.c.l.bf16 %v31_v9  ;;  %v35_v21 = vunpack.c.h.bf16 %v31_v9 }
   0x5   :  { %v46_v14 = vmul.f32 %v38_v5, %v26_v3  ;;  %v47_v15 = vmul.f32 %v39_v6, %v27_v4  ;;  %v48_v23 = vmul.f32 %v40_v16, %v28_v12  ;;  %v49_v24 = vmul.f32 %v41_v17, %v29_v13 }
   0x6   :  { %v42_v18 = vmul.f32 %v32_v10, %v26_v3  ;;  %v43_v19 = vmul.f32 %v33_v11, %v27_v4  ;;  %v44_v26 = vmul.f32 %v34_v20, %v28_v12  ;;  %v45_v27 = vmul.f32 %v35_v21, %v29_v13 }
   0x7   :  { %v52_v22 = vadd.f32 %v47_v15, %v46_v14  ;;  %v53_v28 = vadd.f32 %v49_v24, %v48_v23 }
   0x8   :  { %v50_v25 = vadd.f32 %v43_v19, %v42_v18  ;;  %v51_v29 = vadd.f32 %v45_v27, %v44_v26 }
   0x9   :  { %80 = vadd.xlane.f32.xlu1 %v52_v22 }
   0xa   :  { %71 = vadd.xlane.f32.xlu0 %v50_v25 }
   0xd   :  { %82 = vadd.xlane.f32.xlu1 %v53_v28 }
   0xe   :  { %73 = vadd.xlane.f32.xlu0 %v51_v29 }
  0x96   :  { %v81_v30 = vpop.xlane.xlu1 %80 }
  0x97   :  { %84 = vst.msk [vmem:[%s152_s4] sm:$0xff] %vm75_vm0, %v81_v30  ;;  %v72_v31 = vpop.xlane.xlu0 %71 }
  0x98   :  { %76 = vst.msk [vmem:[%s153_s3] sm:$0xff] %vm75_vm0, %v72_v31 }
  0x9a   :  { %v83_v32 = vpop.xlane.xlu1 %82 }
  0x9b   :  { %85 = vst.msk [vmem:[%s152_s4 + $0x8] sm:$0xff] %vm75_vm0, %v83_v32  ;;  %v74_v33 = vpop.xlane.xlu0 %73 }
  0x9c   :  { %77 = vst.msk [vmem:[%s153_s3 + $0x8] sm:$0xff] %vm75_vm0, %v74_v33 }

</bundles_post_ra>
